<compile_context>
chip_gen: v5e
topology: v5e:2x2
jax: 0.10.0
libtpu: 0.0.40
codegen_flags: <defaults>
</compile_context>

<pallas_src>
import jax
import jax.numpy as jnp
from jax import lax
from jax.experimental import pallas as pl
from jax.experimental.pallas import tpu as pltpu


def _choose_row_tile(B, C, H, W, itemsize):
    """Pick an H-tile: ~1-2 MiB per input block, multiple of 8 (or full H)."""
    target_bytes = 2 * 1024 * 1024
    bytes_per_row = max(1, C * W * itemsize)
    th = max(1, target_bytes // bytes_per_row)
    if th >= H:
        th = H                       # full H -> exempt from the /8 rule
    else:
        th = max(8, (th // 8) * 8)   # sublane-aligned partial tiles
    # v7x has 2 TensorCores: guarantee >= 2 parallel grid steps when possible.
    if B == 1 and th == H and H >= 16:
        half = ((H // 2) // 8) * 8
        if half >= 8:
            th = half
    return th


def _make_meanshift_kernel(c1, c2):
    """Kernel over one (C, TH, W) block of one batch element."""

    def kernel(w_ref, b_ref, x_ref, o_ref):
        # w_ref: (c2, c1) f32 SMEM;  b_ref: (c2,) f32 SMEM
        # x_ref: (c1, TH, W) VMEM;   o_ref: (c2, TH, W) VMEM
        xs = [x_ref[ci].astype(jnp.float32) for ci in range(c1)]   # dense slabs
        for co in range(c2):                                       # tiny static loops
            acc = b_ref[co] + w_ref[co, 0] * xs[0]                 # VPU broadcast-MAC
            for ci in range(1, c1):
                acc = acc + w_ref[co, ci] * xs[ci]
            o_ref[co] = acc.astype(o_ref.dtype)                    # full-width store

    return kernel


@jax.jit
def meanshift_pallas(x_nchw, weight, bias):
    """x_nchw: (B, C1, H, W); weight: (C2, C1, 1, 1); bias: (C2,)."""
    B, C1, H, W = x_nchw.shape
    C2 = weight.shape[0]
    assert weight.shape[1] == C1 and weight.shape[2:] == (1, 1)

    itemsize = jnp.dtype(x_nchw.dtype).itemsize
    th = _choose_row_tile(B, C1, H, W, itemsize)
    grid = (B, pl.cdiv(H, th))

    w2 = weight[:, :, 0, 0].astype(jnp.float32)            # (C2, C1) scalars
    b2 = bias.astype(jnp.float32)                          # (C2,)   scalars

    smem = pl.BlockSpec(memory_space=pltpu.MemorySpace.SMEM)

    out = pl.pallas_call(
        _make_meanshift_kernel(C1, C2),
        out_shape=jax.ShapeDtypeStruct((B, C2, H, W), x_nchw.dtype),
        grid=grid,
        in_specs=[
            smem,                                                      # weight
            smem,                                                      # bias
            pl.BlockSpec((None, C1, th, W), lambda b, h: (b, 0, h, 0)),  # x block
        ],
        out_specs=pl.BlockSpec((None, C2, th, W), lambda b, h: (b, 0, h, 0)),
        compiler_params=pltpu.CompilerParams(
            dimension_semantics=("parallel", "parallel"),
            vmem_limit_bytes=32 * 1024 * 1024),
        cost_estimate=pl.CostEstimate(
            flops=2 * B * C1 * C2 * H * W,
            transcendentals=0,
            bytes_accessed=itemsize * B * (C1 + C2) * H * W),
    )(w2, b2, x_nchw)

    return out


def meanshift_ref(x, weight, bias):
    """Pure-JAX reference: 1x1 conv + bias, NCHW (mirrors nn.Conv2d forward)."""
    dn = ("NCHW", "OIHW", "NCHW")
    y = lax.conv_general_dilated(x.astype(jnp.float32), weight.astype(jnp.float32),
                                 (1, 1), [(0, 0), (0, 0)], dimension_numbers=dn)
    return (y + bias.reshape(1, -1, 1, 1)).astype(x.dtype)


if __name__ == "__main__":
    # MeanShift(c1=3, c2=3, sign=-1): frozen parameters defined by the module.
    B, C, H, W = 2, 3, 16, 16
    rgb_mean = jnp.asarray((0.4488, 0.4371, 0.404), dtype=jnp.float32)
    rgb_std = jnp.asarray((1.0, 1.0, 1.0), dtype=jnp.float32)
    rgb_range = 255.0
    sign = -1.0

    weight = (jnp.eye(3, dtype=jnp.float32) / rgb_std[:, None]).reshape(3, 3, 1, 1)
    bias = sign * rgb_range * rgb_mean / rgb_std

    key = jax.random.PRNGKey(0)
    x = jax.random.uniform(key, (B, C, H, W), dtype=jnp.float32) * rgb_range

    out = jax.block_until_ready(meanshift_pallas(x, weight, bias))
    ref = jax.block_until_ready(meanshift_ref(x, weight, bias))

    assert out.shape == (B, C, H, W)
    assert out.dtype == x.dtype
    assert jnp.allclose(out, ref, atol=1e-3, rtol=1e-5), \
        float(jnp.max(jnp.abs(out - ref)))
    print("KERNEL_OK")
</pallas_src>

<mosaic_0001>
module attributes {stable_mosaic.version = 11 : i64} {
  func.func @kernel(%arg0: i32, %arg1: i32, %arg2: memref<3x3xf32, #tpu.memory_space<smem>>, %arg3: memref<3xf32, #tpu.memory_space<smem>>, %arg4: memref<1x3x16x16xf32, #tpu.memory_space<vmem>>, %arg5: memref<1x3x16x16xf32, #tpu.memory_space<vmem>>) attributes {dimension_semantics = [#tpu.dimension_semantics<parallel>, #tpu.dimension_semantics<parallel>], iteration_bounds = array<i64: 2, 1>, scalar_prefetch = 0 : i64, scratch_operands = 0 : i64, tpu.core_type = #tpu.core_type<tc>, window_params = [{transform_indices = @transform_0, window_bounds = array<i64: 3, 3>}, {transform_indices = @transform_1, window_bounds = array<i64: 3>}, {transform_indices = @transform_2, window_bounds = array<i64: 1, 3, 16, 16>}, {transform_indices = @transform_3, window_bounds = array<i64: 1, 3, 16, 16>}]} {
    %c0 = arith.constant 0 : index
    %c0_0 = arith.constant 0 : index
    %c0_1 = arith.constant 0 : index
    %c0_2 = arith.constant 0 : index
    %0 = vector.load %arg4[%c0, %c0_0, %c0_1, %c0_2] : memref<1x3x16x16xf32, #tpu.memory_space<vmem>>, vector<1x1x16x16xf32>
    %1 = vector.shape_cast %0 : vector<1x1x16x16xf32> to vector<16x16xf32>
    %c0_3 = arith.constant 0 : index
    %c1 = arith.constant 1 : index
    %c0_4 = arith.constant 0 : index
    %c0_5 = arith.constant 0 : index
    %2 = vector.load %arg4[%c0_3, %c1, %c0_4, %c0_5] : memref<1x3x16x16xf32, #tpu.memory_space<vmem>>, vector<1x1x16x16xf32>
    %3 = vector.shape_cast %2 : vector<1x1x16x16xf32> to vector<16x16xf32>
    %c0_6 = arith.constant 0 : index
    %c2 = arith.constant 2 : index
    %c0_7 = arith.constant 0 : index
    %c0_8 = arith.constant 0 : index
    %4 = vector.load %arg4[%c0_6, %c2, %c0_7, %c0_8] : memref<1x3x16x16xf32, #tpu.memory_space<vmem>>, vector<1x1x16x16xf32>
    %5 = vector.shape_cast %4 : vector<1x1x16x16xf32> to vector<16x16xf32>
    %c0_9 = arith.constant 0 : index
    %6 = memref.load %arg3[%c0_9] : memref<3xf32, #tpu.memory_space<smem>>
    %c0_10 = arith.constant 0 : index
    %c0_11 = arith.constant 0 : index
    %7 = memref.load %arg2[%c0_10, %c0_11] : memref<3x3xf32, #tpu.memory_space<smem>>
    %8 = vector.broadcast %7 : f32 to vector<16x16xf32>
    %9 = arith.mulf %8, %1 : vector<16x16xf32>
    %10 = vector.broadcast %6 : f32 to vector<16x16xf32>
    %11 = arith.addf %10, %9 : vector<16x16xf32>
    %c0_12 = arith.constant 0 : index
    %c1_13 = arith.constant 1 : index
    %12 = memref.load %arg2[%c0_12, %c1_13] : memref<3x3xf32, #tpu.memory_space<smem>>
    %13 = vector.broadcast %12 : f32 to vector<16x16xf32>
    %14 = arith.mulf %13, %3 : vector<16x16xf32>
    %15 = arith.addf %11, %14 : vector<16x16xf32>
    %c0_14 = arith.constant 0 : index
    %c2_15 = arith.constant 2 : index
    %16 = memref.load %arg2[%c0_14, %c2_15] : memref<3x3xf32, #tpu.memory_space<smem>>
    %17 = vector.broadcast %16 : f32 to vector<16x16xf32>
    %18 = arith.mulf %17, %5 : vector<16x16xf32>
    %19 = arith.addf %15, %18 : vector<16x16xf32>
    %c0_16 = arith.constant 0 : index
    %c0_17 = arith.constant 0 : index
    %c0_18 = arith.constant 0 : index
    %c0_19 = arith.constant 0 : index
    %20 = vector.load %arg5[%c0_16, %c0_17, %c0_18, %c0_19] : memref<1x3x16x16xf32, #tpu.memory_space<vmem>>, vector<1x1x16x16xf32>
    %21 = vector.shape_cast %20 : vector<1x1x16x16xf32> to vector<16x16xf32>
    %22 = vector.shape_cast %19 : vector<16x16xf32> to vector<1x1x16x16xf32>
    tpu.vector_store %arg5[%c0_16, %c0_17, %c0_18, %c0_19], %22 {strides = array<i32>} : memref<1x3x16x16xf32, #tpu.memory_space<vmem>>, vector<1x1x16x16xf32>,
    %c1_20 = arith.constant 1 : index
    %23 = memref.load %arg3[%c1_20] : memref<3xf32, #tpu.memory_space<smem>>
    %c1_21 = arith.constant 1 : index
    %c0_22 = arith.constant 0 : index
    %24 = memref.load %arg2[%c1_21, %c0_22] : memref<3x3xf32, #tpu.memory_space<smem>>
    %25 = vector.broadcast %24 : f32 to vector<16x16xf32>
    %26 = arith.mulf %25, %1 : vector<16x16xf32>
    %27 = vector.broadcast %23 : f32 to vector<16x16xf32>
    %28 = arith.addf %27, %26 : vector<16x16xf32>
    %c1_23 = arith.constant 1 : index
    %c1_24 = arith.constant 1 : index
    %29 = memref.load %arg2[%c1_23, %c1_24] : memref<3x3xf32, #tpu.memory_space<smem>>
    %30 = vector.broadcast %29 : f32 to vector<16x16xf32>
    %31 = arith.mulf %30, %3 : vector<16x16xf32>
    %32 = arith.addf %28, %31 : vector<16x16xf32>
    %c1_25 = arith.constant 1 : index
    %c2_26 = arith.constant 2 : index
    %33 = memref.load %arg2[%c1_25, %c2_26] : memref<3x3xf32, #tpu.memory_space<smem>>
    %34 = vector.broadcast %33 : f32 to vector<16x16xf32>
    %35 = arith.mulf %34, %5 : vector<16x16xf32>
    %36 = arith.addf %32, %35 : vector<16x16xf32>
    %c0_27 = arith.constant 0 : index
    %c1_28 = arith.constant 1 : index
    %c0_29 = arith.constant 0 : index
    %c0_30 = arith.constant 0 : index
    %37 = vector.load %arg5[%c0_27, %c1_28, %c0_29, %c0_30] : memref<1x3x16x16xf32, #tpu.memory_space<vmem>>, vector<1x1x16x16xf32>
    %38 = vector.shape_cast %37 : vector<1x1x16x16xf32> to vector<16x16xf32>
    %39 = vector.shape_cast %36 : vector<16x16xf32> to vector<1x1x16x16xf32>
    tpu.vector_store %arg5[%c0_27, %c1_28, %c0_29, %c0_30], %39 {strides = array<i32>} : memref<1x3x16x16xf32, #tpu.memory_space<vmem>>, vector<1x1x16x16xf32>,
    %c2_31 = arith.constant 2 : index
    %40 = memref.load %arg3[%c2_31] : memref<3xf32, #tpu.memory_space<smem>>
    %c2_32 = arith.constant 2 : index
    %c0_33 = arith.constant 0 : index
    %41 = memref.load %arg2[%c2_32, %c0_33] : memref<3x3xf32, #tpu.memory_space<smem>>
    %42 = vector.broadcast %41 : f32 to vector<16x16xf32>
    %43 = arith.mulf %42, %1 : vector<16x16xf32>
    %44 = vector.broadcast %40 : f32 to vector<16x16xf32>
    %45 = arith.addf %44, %43 : vector<16x16xf32>
    %c2_34 = arith.constant 2 : index
    %c1_35 = arith.constant 1 : index
    %46 = memref.load %arg2[%c2_34, %c1_35] : memref<3x3xf32, #tpu.memory_space<smem>>
    %47 = vector.broadcast %46 : f32 to vector<16x16xf32>
    %48 = arith.mulf %47, %3 : vector<16x16xf32>
    %49 = arith.addf %45, %48 : vector<16x16xf32>
    %c2_36 = arith.constant 2 : index
    %c2_37 = arith.constant 2 : index
    %50 = memref.load %arg2[%c2_36, %c2_37] : memref<3x3xf32, #tpu.memory_space<smem>>
    %51 = vector.broadcast %50 : f32 to vector<16x16xf32>
    %52 = arith.mulf %51, %5 : vector<16x16xf32>
    %53 = arith.addf %49, %52 : vector<16x16xf32>
    %c0_38 = arith.constant 0 : index
    %c2_39 = arith.constant 2 : index
    %c0_40 = arith.constant 0 : index
    %c0_41 = arith.constant 0 : index
    %54 = vector.load %arg5[%c0_38, %c2_39, %c0_40, %c0_41] : memref<1x3x16x16xf32, #tpu.memory_space<vmem>>, vector<1x1x16x16xf32>
    %55 = vector.shape_cast %54 : vector<1x1x16x16xf32> to vector<16x16xf32>
    %56 = vector.shape_cast %53 : vector<16x16xf32> to vector<1x1x16x16xf32>
    tpu.vector_store %arg5[%c0_38, %c2_39, %c0_40, %c0_41], %56 {strides = array<i32>} : memref<1x3x16x16xf32, #tpu.memory_space<vmem>>, vector<1x1x16x16xf32>,
    return
  }
  func.func @transform_0(%arg0: i32, %arg1: i32) -> (i32, i32) {
    %c0_i32 = arith.constant 0 : i32
    %c0_i32_0 = arith.constant 0 : i32
    %c0_i32_1 = arith.constant 0 : i32
    return %c0_i32, %c0_i32_0 : i32, i32
  }
  func.func @transform_1(%arg0: i32, %arg1: i32) -> i32 {
    %c0_i32 = arith.constant 0 : i32
    %c0_i32_0 = arith.constant 0 : i32
    return %c0_i32 : i32
  }
  func.func @transform_2(%arg0: i32, %arg1: i32) -> (i32, i32, i32, i32) {
    %c0_i32 = arith.constant 0 : i32
    %c0_i32_0 = arith.constant 0 : i32
    %c0_i32_1 = arith.constant 0 : i32
    return %arg0, %c0_i32, %arg1, %c0_i32_0 : i32, i32, i32, i32
  }
  func.func @transform_3(%arg0: i32, %arg1: i32) -> (i32, i32, i32, i32) {
    %c0_i32 = arith.constant 0 : i32
    %c0_i32_0 = arith.constant 0 : i32
    %c0_i32_1 = arith.constant 0 : i32
    return %arg0, %c0_i32, %arg1, %c0_i32_0 : i32, i32, i32, i32
  }
}

</mosaic_0001>

<bundles_post_ra>
// kernel: meanshift_pallas.1
= control target key start
LH: loop header
LB: loop body
LE: loop exit
PB: predicated region body
PF: predicated region fallthrough
CT: control target
= control target key end

     0   :  { %s931_s0 = inlined_call_operand.vmem [shape: f32[3,3], index: 0, kind: input, shape index: {}]   ;;  %s932_s1 = inlined_call_operand.vmem [shape: f32[3], index: 1, kind: input, shape index: {}]   ;;  %s933_s2 = inlined_call_operand.hbm [shape: f32[2,3,16,16], index: 2, kind: input, shape index: {}]   ;;  %s934_s3 = inlined_call_operand.hbm [shape: f32[2,3,16,16], index: 3, kind: output, shape index: {}]  }
   0x1   :  { %935 = sst [smem:[#allocation14_spill]] %s931_s0 }
   0x2   :  { %8 = vsyncpa [#allocation5], 0 }
   0x3   :  { %9 = vsyncpa [#allocation7], 0 }
   0x4   :  { %10 = vsyncpa [#allocation3], 0 }
   0x5   :  { %12 = vsyncpa [#allocation3 + $0x1], 0 }
   0x6   :  { %13 = vsyncpa [#allocation4], 0 }
   0x7   :  { %15 = vsyncpa [#allocation4 + $0x1], 0  ;;  %s742_s12 = smov 0   ;;  %s744_s13 = smov 0  }
   0x8   :  { %s746_s14 = smov 0   ;;  %s748_s15 = smov 0  }
   0x9   :  { %s750_s16 = smov 0   ;;  %s752_s17 = smov 0  }
   0xa LB: > { %s442_s18 = sadd.s32 4294967295, %s714_s17   ;;  %s443_s19 = sadd.s32 4294967294, %s714_s17   ;;  %s714_s17 = sphi %s752_s17, %s21_s17   ;;  %s710_s16 = sphi %s750_s16, %s948_s16   ;;  %s706_s15 = sphi %s748_s15, %s947_s15   ;;  %s702_s14 = sphi %s746_s14, %s946_s14   ;;  %s698_s13 = sphi %s744_s13, %s945_s13   ;;  %s694_s12 = sphi %s742_s12, %s944_s12  }
   0xb   : > { %s84_s20 = sadd.s32 1, %s702_s14  ;;  %p91_p0 = scmp.ne.s32.totalorder %s702_s14, %s698_s13 }
   0xc   : > { %p92_p1 = scmp.eq.s32.totalorder %s714_s17, 0  ;;  %p97_p2 = scmp.ne.s32.totalorder %s698_s13, %s694_s12 }
   0xd   : > { %p780_p3 = scmp.eq.s32.totalorder %s442_s18, 0  ;;  %p123_p4 = scmp.eq.s32.totalorder %s442_s18, 1 }
   0xe   : > { %p784_p5 = por %p92_p1, %p91_p0  ;;  %p129_p6 = scmp.eq.s32.totalorder %s443_s19, 1 }
   0xf   : > { %p790_p7 = por %p780_p3, %p97_p2  ;;  %p794_p8 = por %p123_p4, %p91_p0 }
  0x10   : > { %p798_p9 = por %p129_p6, %p97_p2  ;;  %p444_p10 = scmp.ge.s32.totalorder %s714_s17, 1 }
  0x11   : > { %p136_p11 = scmp.lt.s32.totalorder %s714_s17, 3  ;;  %s941_s0 = sld [smem:[#allocation14_spill]] }
  0x12   : > { %p447_p13 = scmp.ge.s32.totalorder %s714_s17, 2  ;;  %p506_p0 = scmp.lt.s32.totalorder %s714_s17, 2 }
  0x13   : > { %p807_p12 = pnand %p444_p10, %p136_p11  ;;  %s158_s5 = sshll.u32 %s932_s1, 4  ;;  %s159_s5 = int_to_ptr.vmem [resolvable:$true] %s158_s5 }
  0x14   : > { %p820_p2 = pnand %p506_p0, %p784_p5  ;;  %s716_s7 = smov [#allocation2]  }
  0x15   : > { %p489_p1 = pneg %p807_p12  ;;  %s717_s8 = smov [#allocation6]  }
  0x16   : > { %s33_s9 = sadd.s32 1, %s710_s16  ;;  %s169_s10 = sand.u32 1, %s702_s14  }
  0x17   : > { %s148_s28 = sshll.u32 %s941_s0, 4  ;;  %p490_p4 = pnand %p489_p1, %p780_p3  ;;  %s149_s28 = int_to_ptr.vmem [resolvable:$true] %s148_s28 }
  0x18   : > { %p35_p6 = scmp.ge.s32.totalorder %s33_s9, 2  ;;  %s473_s11 = smul.u32 48, %s169_s10 }
  0x19   : > { %492 = dma.vmem_to_smem (!%p490_p4), %s149_s28, 64, %s716_s7, [#allocation5]  }
  0x1a   : > { %495 = dma.vmem_to_smem (!%p490_p4), %s159_s5, 16, %s717_s8, [#allocation7]  }
  0x1b   : > { %s950_s9 = smov (%p35_p6, %s33_s9), 0  ;;  %s474_s18 = smul.u32 48, %s710_s16 }
  0x1c   : > { %s79_s19 = ssub.s32 %s710_s16, %s950_s9  ;;  %s173_s22 = scalar_lea.vmem [#allocation8], %s473_s11 }
  0x1d   : > { %s183_s26 = sshll.u32 %s173_s22, 4  ;;  %p82_p5 = scmp.eq.s32.totalorder %s79_s19, 0  ;;  %s184_s26 = int_to_ptr.vmem [resolvable:$true] %s183_s26 }
  0x1e   : > { %s180_s28 = scalar_lea.hbm %s933_s2, %s474_s18  ;;  %s170_s7 = scalar_lea.sflag [#allocation3], %s169_s10 }
  0x1f   : > { %s181_s4 = sshll.u32 %s180_s28, 4  ;;  %s718_s8 = smov 128   ;;  %s182_s4 = int_to_ptr.hbm [resolvable:$true] %s181_s4 }
  0x20   : > { %s839_s5 = scalar_select %p82_p5, %s702_s14, %s84_s20  }
  0x21   : > { %s719_s0 = smov 8   ;;  %195 = sbr.rel (%p807_p12) target bundleno = 77 (0x4d), region = 32 }
  0x22   : > { %499 = dma.hbm_to_vmem [thread:$0]  (!%p820_p2), %s182_s4, 768, %s184_s26, %s170_s7, %s718_s8, %s718_s8, %s719_s0  }
  0x26   : > { %677 = dma.done.wait (%p780_p3), [#allocation5], 64  }
  0x27   : > { %679 = vsyncadd (%p780_p3), [#allocation5], 4294967232 }
  0x28   : > { %681 = dma.done.wait (%p780_p3), [#allocation7], 16  }
  0x29   : > { %683 = vsyncadd (%p780_p3), [#allocation7], 4294967280  ;;  %s854_s20 = sand.u32 1, %s698_s13  }
  0x2a   : > { %s475_s0 = smul.u32 48, %s854_s20  ;;  %s208_s29 = scalar_lea.sflag [#allocation3], %s854_s20 }
  0x2c   : > { %s211_s6 = scalar_lea.vmem [#allocation8], %s475_s0 }
  0x2d   : > { %685 = dma.done.wait (%p790_p7), %s208_s29, 768  }
  0x2e   : > { %687 = vsyncadd (%p790_p7), %s208_s29, 4294966528 }
  0x2f   : > { %217 = sfence }
  0x30   : > { %s246_s10 = sld [smem:[#allocation6]]  ;;  %v238_v0 = vld [vmem:[%s211_s6] sm:$0xff]  ;;  %v239_v1 = vld [vmem:[%s211_s6 + $0x8] sm:$0xff]  ;;  %v452_v2 = vld [vmem:[%s211_s6 + $0x10] sm:$0xff]  ;;  %vm266_vm0 = vcmask 130048   ;;  %s476_s7 = smul.u32 48, %s706_s15 }
  0x31   : > { %s247_s21 = sld [smem:[#allocation2]]  ;;  %v453_v3 = vld [vmem:[%s211_s6 + $0x18] sm:$0xff]  ;;  %v454_v4 = vld [vmem:[%s211_s6 + $0x20] sm:$0xff]  ;;  %v455_v7 = vld [vmem:[%s211_s6 + $0x28] sm:$0xff]  ;;  %s235_s8 = scalar_lea.vmem [#allocation9], %s475_s0 }
  0x32   : > { %s456_s11 = sld [smem:[#allocation2 + $0x1]]  ;;  %s329_s6 = scalar_lea.hbm %s934_s3, %s476_s7 }
  0x33   : > { %s457_s18 = sld [smem:[#allocation2 + $0x2]]  ;;  %s332_s0 = sshll.u32 %s329_s6, 4  ;;  %s333_s0 = int_to_ptr.hbm [resolvable:$true] %s332_s0 }
  0x34   : > { %s864_s19 = sld [smem:[#allocation6 + $0x1]] }
  0x35   : > { %s866_s22 = sld [smem:[#allocation2 + $0x80]] }
  0x36   : > { %s460_s26 = sld [smem:[#allocation2 + $0x81]]  ;;  %v251_v6 = vstv %s246_s10  ;;  %s330_s10 = sshll.u32 %s235_s8, 4  ;;  %s331_s10 = int_to_ptr.vmem [resolvable:$true] %s330_s10 }
  0x37   : > { %v248_v5 = vstv %s247_s21  ;;  %s868_s23 = sld [smem:[#allocation2 + $0x82]]  ;;  %s316_s21 = scalar_lea.sflag [#allocation4], %s854_s20 }
  0x38   : > { %v249_v8 = vmul.f32 %v248_v5, %v238_v0  ;;  %v255_v9 = vstv %s456_s11  ;;  %v250_v10 = vmul.f32 %v248_v5, %v239_v1  ;;  %s870_s27 = sld [smem:[#allocation6 + $0x2]]  ;;  %s638_s11 = sshra.s32 %s333_s0, 4  ;;  %s639_s11 = int_to_ptr.hbm [resolvable:$true] %s638_s11 }
  0x39   : > { %v256_v11 = vmul.f32 %v452_v2, %v255_v9  ;;  %v261_v12 = vstv %s457_s18  ;;  %v257_v13 = vmul.f32 %v453_v3, %v255_v9  ;;  %s872_s30 = sld [smem:[#allocation2 + $0x100]]  ;;  %s640_s18 = scalar_lea.hbm %s639_s11, 48 }
  0x3a   : > { %v252_v14 = vadd.f32 %v251_v6, %v249_v8  ;;  %v262_v15 = vmul.f32 %v454_v4, %v261_v12  ;;  %v253_v16 = vadd.f32 %v251_v6, %v250_v10  ;;  %v263_v17 = vmul.f32 %v455_v7, %v261_v12  ;;  %s874_s28 = sld [smem:[#allocation2 + $0x101]]  ;;  %p641_p3 = scmp.ne.s32.totalorder %s639_s11, %s640_s18 }
  0x3b   : > { %v271_v18 = vstv %s866_s22  ;;  %v274_v19 = vstv %s864_s19  ;;  %s878_s4 = sld [smem:[#allocation2 + $0x102]]  ;;  %p645_p11 = scmp.lt.s32.totalorder %s639_s11, %s934_s3 }
  0x3c   : > { %v258_v20 = vadd.f32 %v256_v11, %v252_v14  ;;  %v259_v21 = vadd.f32 %v257_v13, %v253_v16  ;;  %v272_v22 = vmul.f32 %v271_v18, %v238_v0  ;;  %v278_v23 = vstv %s460_s26  ;;  %p642_p7 = pnand %p641_p3, %p794_p8  ;;  %s644_s26 = scalar_lea.hbm %s934_s3, 96 }
  0x3d   : > { %v279_v24 = vmul.f32 %v452_v2, %v278_v23  ;;  %v284_v25 = vstv %s868_s23  ;;  %v273_v26 = vmul.f32 %v271_v18, %v239_v1  ;;  %v280_v27 = vmul.f32 %v453_v3, %v278_v23  ;;  %p646_p12 = scmp.lt.s32.totalorder %s644_s26, %s640_s18 }
  0x3e   : > { %v264_v28 = vadd.f32 %v262_v15, %v258_v20  ;;  %v265_v29 = vadd.f32 %v263_v17, %v259_v21  ;;  %v275_v30 = vadd.f32 %v274_v19, %v272_v22  ;;  %v285_v31 = vmul.f32 %v454_v4, %v284_v25  ;;  %p643_p10 = pneg %p642_p7 }
  0x3f   : > { %v276_v32 = vadd.f32 %v274_v19, %v273_v26  ;;  %v286_v33 = vmul.f32 %v455_v7, %v284_v25  ;;  %v294_v34 = vstv %s872_s30  ;;  %v297_v35 = vstv %s870_s27  ;;  %p647_p0 = por %p646_p12, %p645_p11 }
  0x40   : > { %267 = vst.msk [vmem:[%s235_s8] sm:$0xff] %vm266_vm0, %v264_v28  ;;  %v281_v36 = vadd.f32 %v279_v24, %v275_v30  ;;  %v295_v37 = vmul.f32 %v294_v34, %v238_v0  ;;  %v301_v38 = vstv %s874_s28  ;;  %v296_v39 = vmul.f32 %v294_v34, %v239_v1 }
  0x41   : > { %268 = vst.msk [vmem:[%s235_s8 + $0x8] sm:$0xff] %vm266_vm0, %v265_v29  ;;  %v282_v40 = vadd.f32 %v280_v27, %v276_v32  ;;  %v302_v41 = vmul.f32 %v452_v2, %v301_v38  ;;  %v307_v42 = vstv %s878_s4  ;;  %v303_v43 = vmul.f32 %v453_v3, %v301_v38  ;;  %p648_p1 = pnand %p647_p0, %p643_p10 }
  0x42   : > { %v287_v44 = vadd.f32 %v285_v31, %v281_v36  ;;  %v298_v45 = vadd.f32 %v297_v35, %v295_v37  ;;  %v308_v46 = vmul.f32 %v454_v4, %v307_v42  ;;  %v299_v47 = vadd.f32 %v297_v35, %v296_v39 }
  0x43   : > { %v288_v48 = vadd.f32 %v286_v33, %v282_v40  ;;  %v309_v49 = vmul.f32 %v455_v7, %v307_v42 }
  0x44   : > { %462 = vst.msk [vmem:[%s235_s8 + $0x10] sm:$0xff] %vm266_vm0, %v287_v44  ;;  %v304_v50 = vadd.f32 %v302_v41, %v298_v45  ;;  %v305_v51 = vadd.f32 %v303_v43, %v299_v47 }
  0x45   : > { %463 = vst.msk [vmem:[%s235_s8 + $0x18] sm:$0xff] %vm266_vm0, %v288_v48 }
  0x46   : > { %v310_v52 = vadd.f32 %v308_v46, %v304_v50  ;;  %v311_v53 = vadd.f32 %v309_v49, %v305_v51 }
  0x48   : > { %468 = vst.msk [vmem:[%s235_s8 + $0x20] sm:$0xff] %vm266_vm0, %v310_v52 }
  0x49   : > { %469 = vst.msk [vmem:[%s235_s8 + $0x28] sm:$0xff] %vm266_vm0, %v311_v53 }
  0x4a   : > { %651 = shalt.err (!%p648_p1)
}
  0x4b   : > { %s720_s20 = smov 128   ;;  %s721_s30 = smov 8  }
  0x4c   : > { %487 = dma.vmem_to_hbm [thread:$0]  (%p794_p8), %s331_s10, 768, %s333_s0, %s316_s21, %s720_s20, %s720_s20, %s721_s30  }
  0x4d PF: > { %s347_s28 = sand.u32 1, %s694_s12   ;;  %p501_p2 = pnand %p447_p13, %p798_p9 }
  0x4e   : > { %s348_s4 = scalar_lea.sflag [#allocation4], %s347_s28 }
  0x4f   : > { %p502_p4 = pneg %p501_p2 }
  0x51   : > { %689 = dma.done.wait (%p502_p4), %s348_s4, 768  }
  0x52   : > { %691 = vsyncadd (%p502_p4), %s348_s4, 4294966528  ;;  %s21_s17 = sadd.s32 1, %s714_s17   ;;  %s944_s12 = smov %s698_s13 }
  0x53   : > { %p18_p6 = scmp.ge.s32.totalorder %s21_s17, 4   ;;  %s945_s13 = smov %s702_s14 }
  0x54   : > { %s946_s14 = smov %s839_s5  ;;  %s947_s15 = smov %s710_s16 }
  0x55   : > { %s948_s16 = smov %s950_s9  ;;  %20 = sbr.rel (!%p18_p6) target bundleno = 10 (0xa), region = 90 }
  0x5a   :  { %354 = vsyncpa [#allocation3], 1 }
  0x5b   :  { %356 = vsyncpa [#allocation3 + $0x1], 1 }
  0x5c   :  { %357 = vsyncpa [#allocation4], 1 }
  0x5d   :  { %359 = vsyncpa [#allocation4 + $0x1], 1 }
  0x5e   :  { %360 = vsyncpa [#allocation5], 1 }
  0x5f   :  { %362 = vsyncpa [#allocation5 + $0x1], 1 }
  0x60   :  { %363 = vsyncpa [#allocation7], 1 }

</bundles_post_ra>
